<compile_context>
chip_gen: v7x
topology: tpu7x:2x2x1
jax: 0.10.0
libtpu: 0.0.40
codegen_flags: <defaults>
</compile_context>

<pallas_src>
import jax
import jax.numpy as jnp
from jax.experimental import pallas as pl
from jax.experimental.pallas import tpu as pltpu


def _round_up(x: int, m: int) -> int:
    return ((x + m - 1) // m) * m


_TPU_INFO_CACHE = {}


def _vmem_capacity_bytes() -> int:
    """Physical VMEM per TensorCore; conservative 64 MiB fallback."""
    if "cap" not in _TPU_INFO_CACHE:
        cap = 64 * 1024 * 1024
        try:
            info = pltpu.get_tpu_info()
            c = getattr(info, "vmem_capacity_bytes", None)
            if c:
                cap = int(c)
        except Exception:
            pass
        _TPU_INFO_CACHE["cap"] = cap
    return _TPU_INFO_CACHE["cap"]


def _dot_xt_w(x, w):
    # (tm, tk) . (tn, tk) contracted on the shared last (K) dim -> (tm, tn).
    # Native MXU matmul with transposed RHS; no materialized transpose.
    return jax.lax.dot_general(
        x, w,
        dimension_numbers=(((1,), (1,)), ((), ())),
        preferred_element_type=jnp.float32)


# ---- f32-output kernels: accumulate directly into the resident output tile.

def _linear_f32_bias_kernel(x_ref, w_ref, b_ref, o_ref):
    k = pl.program_id(2)

    @pl.when(k == 0)
    def _():
        o_ref[...] = jnp.broadcast_to(b_ref[...], o_ref.shape)

    o_ref[...] += _dot_xt_w(x_ref[...], w_ref[...])


def _linear_f32_nobias_kernel(x_ref, w_ref, o_ref):
    k = pl.program_id(2)

    @pl.when(k == 0)
    def _():
        o_ref[...] = jnp.zeros_like(o_ref)

    o_ref[...] += _dot_xt_w(x_ref[...], w_ref[...])


# ---- low-precision-output kernels: f32 scratch accumulator + cast epilogue.

def _linear_acc_bias_kernel(x_ref, w_ref, b_ref, o_ref, acc_ref):
    k = pl.program_id(2)

    @pl.when(k == 0)
    def _():
        acc_ref[...] = jnp.zeros_like(acc_ref)

    acc_ref[...] += _dot_xt_w(x_ref[...], w_ref[...])

    @pl.when(k == pl.num_programs(2) - 1)
    def _():
        o_ref[...] = (acc_ref[...] + b_ref[...]).astype(o_ref.dtype)


def _linear_acc_nobias_kernel(x_ref, w_ref, o_ref, acc_ref):
    k = pl.program_id(2)

    @pl.when(k == 0)
    def _():
        acc_ref[...] = jnp.zeros_like(acc_ref)

    acc_ref[...] += _dot_xt_w(x_ref[...], w_ref[...])

    @pl.when(k == pl.num_programs(2) - 1)
    def _():
        o_ref[...] = acc_ref[...].astype(o_ref.dtype)


def linear_forward(x, weight, bias=None, *,
                   tm=None, tn=None, tk=None, compute_dtype=None):
    """y = x @ weight.T (+ bias), matching PyTorch Linear.forward semantics.

    x: (*, in_features)   weight: (out_features, in_features)
    bias: (out_features,) or None
    returns: (*, out_features)

    For large GEMMs pass compute_dtype=jnp.bfloat16 (full-rate MXU, f32
    accumulation); ideally store x/weight in bf16 so no per-call cast is paid.
    """
    out_features, in_features = weight.shape
    lead_shape = x.shape[:-1]
    out_dtype = x.dtype

    x2d = x.reshape(-1, in_features)
    M, K, N = x2d.shape[0], in_features, out_features

    # Optional low-precision MXU path (cast in the wrapper, never per k-step).
    if compute_dtype is not None:
        x2d = x2d.astype(compute_dtype)
        weight = weight.astype(compute_dtype)

    # ---- generation-aware tile sizes / VMEM budget ----
    cap = _vmem_capacity_bytes()
    big_vmem = cap >= 96 * 1024 * 1024      # v5e / v6e (128 MiB per TC)
    if tm is None:
        tm = 512
    if tn is None:
        tn = 1024
    if tk is None:
        tk = 2048 if big_vmem else 1024     # v7x has 64 MiB per TC
    vmem_budget = (100 * 1024 * 1024) if big_vmem else (48 * 1024 * 1024)

    # Sublane tile of the compute dtype: 8 (f32), 16 (bf16), 32 (int8/fp8).
    compute_itemsize = jnp.dtype(x2d.dtype).itemsize
    sublane = max(8, 32 // compute_itemsize)

    # Clamp tiles to the aligned problem size (small problems -> one tile).
    tm = min(tm, _round_up(M, sublane))
    tn = min(tn, _round_up(N, 128))
    tk = min(tk, _round_up(K, 128))

    Mp, Np, Kp = _round_up(M, tm), _round_up(N, tn), _round_up(K, tk)

    # Pad only when needed (no-op copies are skipped entirely).
    if (Mp, Kp) != (M, K):
        x2d = jnp.pad(x2d, ((0, Mp - M), (0, Kp - K)))
    w = weight
    if (Np, Kp) != (N, K):
        w = jnp.pad(w, ((0, Np - N), (0, Kp - K)))

    grid = (Mp // tm, Np // tn, Kp // tk)

    direct_f32 = jnp.dtype(out_dtype) == jnp.dtype(jnp.float32)

    # VMEM: 2 pipeline buffers per input/output (+ f32 scratch if needed).
    in_bytes = jnp.dtype(x2d.dtype).itemsize
    w_bytes = jnp.dtype(w.dtype).itemsize
    out_bytes = jnp.dtype(out_dtype).itemsize
    vmem_est = (2 * (tm * tk * in_bytes + tn * tk * w_bytes + tn * 4)
                + 2 * tm * tn * out_bytes
                + (0 if direct_f32 else tm * tn * 4))
    vmem_limit = int(min(vmem_budget,
                         max(32 * 1024 * 1024, int(1.5 * vmem_est))))

    compiler_params = pltpu.CompilerParams(
        dimension_semantics=("parallel", "parallel", "arbitrary"),
        vmem_limit_bytes=vmem_limit)

    x_spec = pl.BlockSpec((tm, tk), lambda i, j, k: (i, k))
    w_spec = pl.BlockSpec((tn, tk), lambda i, j, k: (j, k))
    b_spec = pl.BlockSpec((1, tn), lambda i, j, k: (0, j))
    out_spec = pl.BlockSpec((tm, tn), lambda i, j, k: (i, j))
    out_shape = jax.ShapeDtypeStruct((Mp, Np), out_dtype)
    scratch = [] if direct_f32 else [pltpu.VMEM((tm, tn), jnp.float32)]

    if bias is not None:
        b2d = bias.reshape(1, N).astype(jnp.float32)
        if Np != N:
            b2d = jnp.pad(b2d, ((0, 0), (0, Np - N)))
        kernel = _linear_f32_bias_kernel if direct_f32 else _linear_acc_bias_kernel
        y2d = pl.pallas_call(
            kernel,
            out_shape=out_shape,
            grid_spec=pltpu.PrefetchScalarGridSpec(
                num_scalar_prefetch=0,
                grid=grid,
                in_specs=[x_spec, w_spec, b_spec],
                out_specs=out_spec,
                scratch_shapes=scratch),
            compiler_params=compiler_params,
        )(x2d, w, b2d)
    else:
        kernel = _linear_f32_nobias_kernel if direct_f32 else _linear_acc_nobias_kernel
        y2d = pl.pallas_call(
            kernel,
            out_shape=out_shape,
            grid_spec=pltpu.PrefetchScalarGridSpec(
                num_scalar_prefetch=0,
                grid=grid,
                in_specs=[x_spec, w_spec],
                out_specs=out_spec,
                scratch_shapes=scratch),
            compiler_params=compiler_params,
        )(x2d, w)

    y2d = y2d[:M, :N]
    return y2d.reshape(*lead_shape, out_features)


def init_linear_params(key, in_features, out_features, bias=True,
                       dtype=jnp.float32):
    """Deterministic uniform(-1/sqrt(in), 1/sqrt(in)) init, like the module."""
    bound = 1.0 / (in_features ** 0.5)
    kw, kb = jax.random.split(key)
    weight = jax.random.uniform(
        kw, (out_features, in_features), dtype=dtype, minval=-bound, maxval=bound)
    b = None
    if bias:
        b = jax.random.uniform(
            kb, (out_features,), dtype=dtype, minval=-bound, maxval=bound)
    return weight, b


if __name__ == "__main__":
    key = jax.random.PRNGKey(0)
    k_x, k_p = jax.random.split(key)

    batch, seq, in_features, out_features = 2, 8, 32, 16
    x = jax.random.normal(k_x, (batch, seq, in_features), dtype=jnp.float32)
    weight, bias = init_linear_params(k_p, in_features, out_features, bias=True)

    y_ref = jnp.einsum("bsi,oi->bso", x, weight) + bias

    # f32 path (tight tolerance).
    y = jax.block_until_ready(linear_forward(x, weight, bias))
    assert y.shape == (batch, seq, out_features)
    assert jnp.allclose(y, y_ref, atol=1e-4, rtol=1e-4)

    # No-bias path.
    y_nb = jax.block_until_ready(linear_forward(x, weight, None))
    y_nb_ref = jnp.einsum("bsi,oi->bso", x, weight)
    assert jnp.allclose(y_nb, y_nb_ref, atol=1e-4, rtol=1e-4)

    # bf16 MXU path (f32 accumulation), looser tolerance.
    y_bf16 = jax.block_until_ready(
        linear_forward(x, weight, bias, compute_dtype=jnp.bfloat16))
    assert y_bf16.dtype == jnp.float32
    assert jnp.allclose(y_bf16, y_ref, atol=3e-2, rtol=3e-2)

    print("KERNEL_OK")
</pallas_src>

<mosaic_0001>
module attributes {stable_mosaic.version = 11 : i64} {
  func.func @_linear_f32_bias_kernel(%arg0: i32, %arg1: i32, %arg2: i32, %arg3: memref<16x128xf32, #tpu.memory_space<vmem>>, %arg4: memref<128x128xf32, #tpu.memory_space<vmem>>, %arg5: memref<1x128xf32, #tpu.memory_space<vmem>>, %arg6: memref<16x128xf32, #tpu.memory_space<vmem>>) attributes {dimension_semantics = [#tpu.dimension_semantics<parallel>, #tpu.dimension_semantics<parallel>, #tpu.dimension_semantics<arbitrary>], iteration_bounds = array<i64: 1, 1, 1>, scalar_prefetch = 0 : i64, scratch_operands = 0 : i64, tpu.core_type = #tpu.core_type<tc>, window_params = [{transform_indices = @transform_0, window_bounds = array<i64: 16, 128>}, {transform_indices = @transform_1, window_bounds = array<i64: 128, 128>}, {transform_indices = @transform_2, window_bounds = array<i64: 1, 128>}, {transform_indices = @transform_3, window_bounds = array<i64: 16, 128>}]} {
    %c0_i32 = arith.constant 0 : i32
    %0 = arith.cmpi eq, %arg2, %c0_i32 : i32
    %1 = arith.extui %0 : i1 to i32
    %c0_i32_0 = arith.constant 0 : i32
    %2 = arith.cmpi ne, %1, %c0_i32_0 : i32
    scf.if %2 {
      %c0_8 = arith.constant 0 : index
      %c0_9 = arith.constant 0 : index
      %9 = vector.load %arg5[%c0_8, %c0_9] : memref<1x128xf32, #tpu.memory_space<vmem>>, vector<1x128xf32>
      %10 = vector.shape_cast %9 : vector<1x128xf32> to vector<1x128xf32>
      %11 = vector.broadcast %10 : vector<1x128xf32> to vector<16x128xf32>
      %c0_10 = arith.constant 0 : index
      %c0_11 = arith.constant 0 : index
      %12 = vector.load %arg6[%c0_10, %c0_11] : memref<16x128xf32, #tpu.memory_space<vmem>>, vector<16x128xf32>
      tpu.vector_store %arg6[%c0_10, %c0_11], %11 {strides = array<i32>} : memref<16x128xf32, #tpu.memory_space<vmem>>, vector<16x128xf32>,
    } else {
    }
    %c0 = arith.constant 0 : index
    %c0_1 = arith.constant 0 : index
    %3 = vector.load %arg6[%c0, %c0_1] : memref<16x128xf32, #tpu.memory_space<vmem>>, vector<16x128xf32>
    %c0_2 = arith.constant 0 : index
    %c0_3 = arith.constant 0 : index
    %4 = vector.load %arg3[%c0_2, %c0_3] : memref<16x128xf32, #tpu.memory_space<vmem>>, vector<16x128xf32>
    %c0_4 = arith.constant 0 : index
    %c0_5 = arith.constant 0 : index
    %5 = vector.load %arg4[%c0_4, %c0_5] : memref<128x128xf32, #tpu.memory_space<vmem>>, vector<128x128xf32>
    %cst = arith.constant dense<0.000000e+00> : vector<16x128xf32>
    %6 = tpu.matmul %4, %5, %cst {dimension_numbers = #tpu.dot_dimension_numbers<[1], [1], [0], [0], [0, 0, 1, 0], [], []>} : vector<16x128xf32>, vector<128x128xf32>, vector<16x128xf32> -> vector<16x128xf32>
    %7 = arith.addf %3, %6 : vector<16x128xf32>
    %c0_6 = arith.constant 0 : index
    %c0_7 = arith.constant 0 : index
    %8 = vector.load %arg6[%c0_6, %c0_7] : memref<16x128xf32, #tpu.memory_space<vmem>>, vector<16x128xf32>
    tpu.vector_store %arg6[%c0_6, %c0_7], %7 {strides = array<i32>} : memref<16x128xf32, #tpu.memory_space<vmem>>, vector<16x128xf32>,
    return
  }
  func.func @transform_0(%arg0: i32, %arg1: i32, %arg2: i32) -> (i32, i32) {
    %c0_i32 = arith.constant 0 : i32
    return %arg0, %arg2 : i32, i32
  }
  func.func @transform_1(%arg0: i32, %arg1: i32, %arg2: i32) -> (i32, i32) {
    %c0_i32 = arith.constant 0 : i32
    return %arg1, %arg2 : i32, i32
  }
  func.func @transform_2(%arg0: i32, %arg1: i32, %arg2: i32) -> (i32, i32) {
    %c0_i32 = arith.constant 0 : i32
    %c0_i32_0 = arith.constant 0 : i32
    return %c0_i32, %arg1 : i32, i32
  }
  func.func @transform_3(%arg0: i32, %arg1: i32, %arg2: i32) -> (i32, i32) {
    %c0_i32 = arith.constant 0 : i32
    return %arg0, %arg1 : i32, i32
  }
}

</mosaic_0001>

<bundles_post_ra>
// kernel: tpu_custom_call.1
= control target key start
LH: loop header
LB: loop body
LE: loop exit
PB: predicated region body
PF: predicated region fallthrough
CT: control target
= control target key end

     0   :  { %8 = vsyncpa [#allocation3], 0  ;;  %s409_s0 = inlined_call_operand.hbm [shape: f32[16,128], index: 0, kind: input, shape index: {}]   ;;  %s410_s1 = inlined_call_operand.hbm [shape: f32[128,128], index: 1, kind: input, shape index: {}]   ;;  %s411_s2 = inlined_call_operand.vmem [shape: f32[1,128], index: 2, kind: input, shape index: {}]   ;;  %s412_s3 = inlined_call_operand.hbm [shape: f32[16,128], index: 3, kind: output, shape index: {}]  }
   0x1   :  { %9 = vsyncpa [#allocation6], 0 }
   0x2   :  { %10 = vsyncpa [#allocation4], 0  ;;  %s336_s12 = smov [#allocation2]   ;;  %s264_s16 = scalar_lea.hbm %s409_s0, 256 }
   0x3   :  { %s16_s13 = sshll.u32 %s336_s12, 4  ;;  %p265_p0 = scmp.ne.s32.totalorder %s409_s0, %s264_s16  ;;  %s17_s13 = int_to_ptr.vmem [resolvable:$true] %s16_s13 }
   0x4   :  { %p268_p1 = scmp.lt.u32.totalorder %s264_s16, %s409_s0 }
   0x6   :  { %p270_p2 = pnand %p268_p1, %p265_p0 }
   0x8   :  { %273 = shalt.err (!%p270_p2)
}
   0x9   :  { %s274_s21 = scalar_lea.vmem %s17_s13, 256  ;;  %p279_p4 = scmp.lt.s32.totalorder %s17_s13, %s17_s13 }
   0xa   :  { %p275_p3 = scmp.ne.s32.totalorder %s17_s13, %s274_s21  ;;  %p280_p5 = scmp.lt.s32.totalorder %s274_s21, %s274_s21 }
   0xc   :  { %p281_p6 = por %p280_p5, %p279_p4 }
   0xe   :  { %p282_p7 = pnand %p281_p6, %p275_p3 }
  0x10   :  { %285 = shalt.err (!%p282_p7)
}
  0x11   :  { %s337_s22 = smov 128   ;;  %s338_s23 = smov 8  }
  0x12   :  { %22 = dma.hbm_to_vmem [thread:$0]  %s409_s0, 256, %s17_s13, [#allocation3], %s337_s22, %s337_s22, %s338_s23  }
  0x13   :  { %s339_s26 = smov [#allocation5]   ;;  %s286_s30 = scalar_lea.hbm %s410_s1, 2048 }
  0x14   :  { %s28_s27 = sshll.u32 %s339_s26, 4  ;;  %p287_p8 = scmp.ne.s32.totalorder %s410_s1, %s286_s30  ;;  %s29_s27 = int_to_ptr.vmem [resolvable:$true] %s28_s27 }
  0x15   :  { %p290_p9 = scmp.lt.u32.totalorder %s286_s30, %s410_s1 }
  0x17   :  { %p292_p10 = pnand %p290_p9, %p287_p8 }
  0x19   :  { %295 = shalt.err (!%p292_p10)
}
  0x1a   :  { %s296_s8 = scalar_lea.vmem %s29_s27, 2048  ;;  %p301_p12 = scmp.lt.s32.totalorder %s29_s27, %s29_s27 }
  0x1b   :  { %p297_p11 = scmp.ne.s32.totalorder %s29_s27, %s296_s8  ;;  %p302_p13 = scmp.lt.s32.totalorder %s296_s8, %s296_s8 }
  0x1d   :  { %p303_p0 = por %p302_p13, %p301_p12 }
  0x1f   :  { %p304_p1 = pnand %p303_p0, %p297_p11 }
  0x21   :  { %307 = shalt.err (!%p304_p1)
}
  0x22   :  { %34 = dma.hbm_to_vmem [thread:$0]  %s410_s1, 2048, %s29_s27, [#allocation6], %s337_s22, %s337_s22, %s338_s23  }
  0x23   :  { %330 = dma.done.wait [#allocation3], 256  }
  0x24   :  { %331 = vsyncadd [#allocation3], 4294967040 }
  0x25   :  { %332 = dma.done.wait [#allocation6], 2048  }
  0x26   :  { %333 = vsyncadd [#allocation6], 4294965248  ;;  %v60_v0 = vld [vmem:[#allocation5] sm:$0xff]  ;;  %v61_v1 = vld [vmem:[#allocation5 + $0x8] sm:$0xff]  ;;  %s340_s11 = smov [#allocation7]  }
  0x27   :  { %v62_v2 = vld [vmem:[#allocation5 + $0x10] sm:$0xff]  ;;  %v227_v3 = vpack.c.bf16 %v61_v1, %v60_v0  ;;  %v63_v4 = vld [vmem:[#allocation5 + $0x18] sm:$0xff]  ;;  %v64_v7 = vld [vmem:[#allocation5 + $0x20] sm:$0xff]  ;;  %s160_s12 = sshll.u32 %s340_s11, 4  ;;  %s161_s12 = int_to_ptr.vmem [resolvable:$true] %s160_s12 }
  0x28   :  { %v231_v5 = vpack.c.bf16 %v63_v4, %v62_v2  ;;  %v58_v6 = vld [vmem:[#allocation2] sm:$0xff]  ;;  %v65_v8 = vld [vmem:[#allocation5 + $0x28] sm:$0xff]  ;;  %v67_v11 = vld [vmem:[#allocation5 + $0x38] sm:$0xff]  ;;  %s308_s13 = scalar_lea.vmem %s161_s12, 256  ;;  %p313_p3 = scmp.lt.s32.totalorder %s161_s12, %s161_s12 }
  0x29   :  { %228 = vmatprep.subr.bf16.mxu0 %v227_v3  ;;  %224 = vmatprep.mubr.f32.mxu0 %v58_v6  ;;  %v235_v9 = vpack.c.bf16 %v65_v8, %v64_v7  ;;  %v66_v10 = vld [vmem:[#allocation5 + $0x30] sm:$0xff]  ;;  %v68_v13 = vld [vmem:[#allocation5 + $0x40] sm:$0xff]  ;;  %v69_v14 = vld [vmem:[#allocation5 + $0x48] sm:$0xff]  ;;  %p309_p2 = scmp.ne.s32.totalorder %s161_s12, %s308_s13  ;;  %p314_p4 = scmp.lt.s32.totalorder %s308_s13, %s308_s13 }
  0x2a   :  { %230 = vmatpush3.bf16.xpose.msra.mxu0 %v227_v3  ;;  %v239_v12 = vpack.c.bf16 %v67_v11, %v66_v10  ;;  %v243_v15 = vpack.c.bf16 %v69_v14, %v68_v13  ;;  %v70_v16 = vld [vmem:[#allocation5 + $0x50] sm:$0xff]  ;;  %v71_v17 = vld [vmem:[#allocation5 + $0x58] sm:$0xff]  ;;  %v72_v19 = vld [vmem:[#allocation5 + $0x60] sm:$0xff] }
  0x2b   :  { %232 = vmatprep.subr.bf16.mxu0 %v231_v5  ;;  %v247_v18 = vpack.c.bf16 %v71_v17, %v70_v16  ;;  %v73_v20 = vld [vmem:[#allocation5 + $0x68] sm:$0xff]  ;;  %v74_v22 = vld [vmem:[#allocation5 + $0x70] sm:$0xff]  ;;  %v75_v23 = vld [vmem:[#allocation5 + $0x78] sm:$0xff]  ;;  %p315_p5 = por %p314_p4, %p313_p3 }
  0x2c   :  { %v251_v21 = vpack.c.bf16 %v73_v20, %v72_v19  ;;  %v255_v24 = vpack.c.bf16 %v75_v23, %v74_v22  ;;  %v59_v25 = vld [vmem:[#allocation2 + $0x8] sm:$0xff]  ;;  %v173_v26 = vld [vmem:[%s411_s2] ss:$0 sm:$0xff] }
  0x2d   :  { %p316_p6 = pnand %p315_p5, %p309_p2 }
  0x32   :  { %234 = vmatpush3.bf16.xpose.msra.mxu0 %v231_v5 }
  0x33   :  { %236 = vmatprep.subr.bf16.mxu0 %v235_v9 }
  0x3a   :  { %238 = vmatpush3.bf16.xpose.msra.mxu0 %v235_v9 }
  0x3b   :  { %240 = vmatprep.subr.bf16.mxu0 %v239_v12 }
  0x42   :  { %242 = vmatpush3.bf16.xpose.msra.mxu0 %v239_v12 }
  0x43   :  { %244 = vmatprep.subr.bf16.mxu0 %v243_v15 }
  0x4a   :  { %246 = vmatpush3.bf16.xpose.msra.mxu0 %v243_v15 }
  0x4b   :  { %248 = vmatprep.subr.bf16.mxu0 %v247_v18 }
  0x52   :  { %250 = vmatpush3.bf16.xpose.msra.mxu0 %v247_v18 }
  0x53   :  { %252 = vmatprep.subr.bf16.mxu0 %v251_v21 }
  0x5a   :  { %254 = vmatpush3.bf16.xpose.msra.mxu0 %v251_v21 }
  0x5b   :  { %256 = vmatprep.subr.bf16.mxu0 %v255_v24 }
  0x62   :  { %258 = vmatpush3.bf16.xpose.msra.mxu0 %v255_v24 }
  0x69   :  { %225 = vmatmul.mubr.f32.vlgmr.msra.gmra.mrb[0].mxu0 %v59_v25 }
 0x13c   :  { %v226_v27 = vpop.f32.mrb[0].mxu0 }
 0x13d   :  { %v152_v28 = vadd.f32 %v226_v27, %v173_v26  ;;  %v142_v29 = vpop.f32.mrb[1].mxu0 }
 0x13e   :  { %v151_v30 = vadd.f32 %v173_v26, %v142_v29 }
 0x13f   :  { %154 = vst [vmem:[#allocation7 + $0x8] sm:$0xff] %v152_v28 }
 0x140   :  { %153 = vst [vmem:[#allocation7] sm:$0xff] %v151_v30 }
 0x141   :  { %319 = shalt.err (!%p316_p6)
}
 0x142   :  { %s320_s2 = scalar_lea.hbm %s412_s3, 256 }
 0x143   :  { %p321_p7 = scmp.ne.s32.totalorder %s412_s3, %s320_s2  ;;  %p324_p8 = scmp.lt.u32.totalorder %s320_s2, %s412_s3 }
 0x145   :  { %p326_p9 = pnand %p324_p8, %p321_p7 }
 0x147   :  { %329 = shalt.err (!%p326_p9)
}
 0x148   :  { %166 = dma.vmem_to_hbm [thread:$0]  %s161_s12, 256, %s412_s3, [#allocation4], %s337_s22, %s337_s22, %s338_s23  }
 0x149   :  { %334 = dma.done.wait [#allocation4], 256  }
 0x14a   :  { %335 = vsyncadd [#allocation4], 4294967040 }
 0x14b   :  { %170 = vsyncpa [#allocation3], 1 }
 0x14c   :  { %171 = vsyncpa [#allocation6], 1 }
 0x14d   :  { %172 = vsyncpa [#allocation4], 1 }

</bundles_post_ra>
